<compile_context>
chip_gen: v5e
topology: v5e:2x2
jax: 0.10.0
libtpu: 0.0.40
codegen_flags: <defaults>
</compile_context>

<pallas_src>
import functools

import jax
import jax.numpy as jnp
from jax.experimental import pallas as pl
from jax.experimental.pallas import tpu as pltpu


def _round_up(x, m):
    return (x + m - 1) // m * m


def _char_conv_maxpool_kernel(x_ref, w_ref, b_ref, o_ref, *, l_out, channels):
    # x_ref: (tile_n, K_pad)    flat char-embedding rows (bf16)
    # w_ref: (K_pad, P_pad)     banded conv weight; column block t = conv position t (bf16)
    # b_ref: (1, channels)      conv bias (f32)
    # o_ref: (tile_n, channels) max-pooled conv output per word (f32)
    acc = jnp.dot(x_ref[...], w_ref[...], preferred_element_type=jnp.float32)
    running = acc[:, 0:channels]
    for t in range(1, l_out):                       # static loop: fused max-pool
        running = jnp.maximum(running, acc[:, t * channels:(t + 1) * channels])
    o_ref[...] = running + b_ref[...]               # bias is constant over positions


def _build_banded_weight(conv_w, word_len):
    """(C,1,char_dim,width) conv weight -> (word_len*char_dim, l_out*C) banded matrix.

    Wb[e*word_len + t + w, t*C + c] = conv_w[c, 0, e, w], which reproduces the
    PyTorch raw-view conv: out[t, c] = sum_{e,w} W[c,0,e,w] * flat[e*word_len + t + w].
    """
    C, _, char_dim, width = conv_w.shape
    l_out = word_len - width + 1
    w_ec = jnp.transpose(conv_w[:, 0, :, :], (1, 2, 0))    # (char_dim, width, C)
    rows_e = jnp.arange(char_dim) * word_len
    wb = jnp.zeros((word_len * char_dim, l_out * C), dtype=jnp.float32)
    for t in range(l_out):
        for w in range(width):
            # Distinct rows for every (e, w) within a column block -> plain set.
            wb = wb.at[rows_e + t + w, t * C:(t + 1) * C].set(w_ec[:, w, :])
    return wb


def char_embedder_forward(input_ids, emb_table, conv_w, conv_b, *,
                          tile_n=512, compute_dtype=jnp.bfloat16):
    """input_ids: (B, S, word_len) int32 -> (B, S, char_channel_size) f32."""
    B, S, word_len = input_ids.shape
    char_dim = emb_table.shape[1]
    C, in_ch, kH, width = conv_w.shape
    assert in_ch == 1 and kH == char_dim
    l_out = word_len - width + 1
    if l_out < 1:
        raise ValueError("word_len must be >= char_channel_width")

    N = B * S
    K = word_len * char_dim
    K_pad = _round_up(K, 128)          # lane-dense activation rows
    P = l_out * C
    P_pad = _round_up(P, 128)          # lane-dense matmul output

    # Tile selection: as large as possible (per-grid-step overhead ~0.35us), but
    # keep a few grid steps when there is enough work (feeds both v7x TCs).
    tile = _round_up(min(tile_n, _round_up(N, 16)), 16)
    while tile > 128 and pl.cdiv(N, tile) < 4:
        tile //= 2
    N_pad = _round_up(N, tile)

    # Embedding lookup (dropout is identity in eval mode), raw flatten to
    # (N, word_len*char_dim). No transpose: the .view() scramble lives in wb.
    # TODO(synk): training-mode dropout (p=config['dropout_rate']) omitted; eval semantics used.
    # TODO(synk): embedding lookup could be folded into the banded weight so the
    #             kernel consumes int32 ids only (~16x less HBM input traffic).
    x = jnp.take(emb_table.astype(compute_dtype), input_ids, axis=0)   # (B,S,word_len,char_dim)
    x2d = jnp.pad(x.reshape(N, K), ((0, N_pad - N), (0, K_pad - K)))

    wb = _build_banded_weight(conv_w, word_len).astype(compute_dtype)
    wb = jnp.pad(wb, ((0, K_pad - K), (0, P_pad - P)))
    bias = conv_b.reshape(1, C).astype(jnp.float32)

    grid = (N_pad // tile,)
    out = pl.pallas_call(
        functools.partial(_char_conv_maxpool_kernel, l_out=l_out, channels=C),
        out_shape=jax.ShapeDtypeStruct((N_pad, C), jnp.float32),
        grid=grid,
        in_specs=[
            pl.BlockSpec((tile, K_pad), lambda i: (i, 0)),
            pl.BlockSpec((K_pad, P_pad), lambda i: (0, 0)),   # weight stays resident in VMEM
            pl.BlockSpec((1, C), lambda i: (0, 0)),           # bias stays resident in VMEM
        ],
        out_specs=pl.BlockSpec((tile, C), lambda i: (i, 0)),
        compiler_params=pltpu.CompilerParams(dimension_semantics=("parallel",)),
    )(x2d, wb, bias)

    return out[:N].reshape(B, S, C)


if __name__ == "__main__":
    config = dict(char_embedding_size=16, char_channel_size=32,
                  char_channel_width=5, dropout_rate=0.1)
    vocab_size = 20
    B, S, word_len = 2, 8, 12

    key = jax.random.PRNGKey(0)
    k1, k2, k3, k4 = jax.random.split(key, 4)

    # Embedding init mirrors `.weight.data.uniform_(-0.001, 0.001)`.
    # (PyTorch's uniform_ overwrites the padding_idx row too, so no zeroing.)
    emb_table = jax.random.uniform(
        k1, (vocab_size, config['char_embedding_size']),
        dtype=jnp.float32, minval=-0.001, maxval=0.001)

    # Conv2d default init: U(-1/sqrt(fan_in), 1/sqrt(fan_in)).
    fan_in = 1 * config['char_embedding_size'] * config['char_channel_width']
    bound = 1.0 / (fan_in ** 0.5)
    conv_w = jax.random.uniform(
        k2, (config['char_channel_size'], 1,
             config['char_embedding_size'], config['char_channel_width']),
        dtype=jnp.float32, minval=-bound, maxval=bound)
    conv_b = jax.random.uniform(
        k3, (config['char_channel_size'],),
        dtype=jnp.float32, minval=-bound, maxval=bound)

    input_ids = jax.random.randint(k4, (B, S, word_len), 0, vocab_size, jnp.int32)

    out = char_embedder_forward(input_ids, emb_table, conv_w, conv_b)
    out = jax.block_until_ready(out)

    # Plain-JAX f32 reference of the exact PyTorch math.
    x = jnp.take(emb_table, input_ids, axis=0)
    m = x.reshape(B * S, config['char_embedding_size'], word_len)
    width = config['char_channel_width']
    l_out = word_len - width + 1
    patches = jnp.stack([m[:, :, t:t + width] for t in range(l_out)], axis=1)
    conv = jnp.einsum('nlew,cew->nlc', patches, conv_w[:, 0]) + conv_b
    ref = conv.max(axis=1).reshape(B, S, -1)

    assert out.shape == (B, S, config['char_channel_size'])
    # bf16 activation/weight -> slightly looser tolerance than pure f32.
    assert jnp.allclose(out, ref, atol=5e-4, rtol=1e-3)
    print("KERNEL_OK")
</pallas_src>

<mosaic_0001>
module attributes {stable_mosaic.version = 11 : i64} {
  func.func @_char_conv_maxpool_kernel(%arg0: i32, %arg1: memref<16x256xbf16, #tpu.memory_space<vmem>>, %arg2: memref<256x256xbf16, #tpu.memory_space<vmem>>, %arg3: memref<1x32xf32, #tpu.memory_space<vmem>>, %arg4: memref<16x32xf32, #tpu.memory_space<vmem>>) attributes {dimension_semantics = [#tpu.dimension_semantics<parallel>], iteration_bounds = array<i64: 1>, scalar_prefetch = 0 : i64, scratch_operands = 0 : i64, tpu.core_type = #tpu.core_type<tc>, window_params = [{transform_indices = @transform_0, window_bounds = array<i64: 16, 256>}, {pipeline_mode = #tpu.pipeline_mode<synchronous>, transform_indices = @transform_1, window_bounds = array<i64: 256, 256>}, {pipeline_mode = #tpu.pipeline_mode<synchronous>, transform_indices = @transform_2, window_bounds = array<i64: 1, 32>}, {transform_indices = @transform_3, window_bounds = array<i64: 16, 32>}]} {
    %c0 = arith.constant 0 : index
    %c0_0 = arith.constant 0 : index
    %0 = vector.load %arg1[%c0, %c0_0] : memref<16x256xbf16, #tpu.memory_space<vmem>>, vector<16x256xbf16>
    %c0_1 = arith.constant 0 : index
    %c0_2 = arith.constant 0 : index
    %1 = vector.load %arg2[%c0_1, %c0_2] : memref<256x256xbf16, #tpu.memory_space<vmem>>, vector<256x256xbf16>
    %cst = arith.constant dense<0.000000e+00> : vector<16x256xf32>
    %2 = tpu.matmul %0, %1, %cst {dimension_numbers = #tpu.dot_dimension_numbers<[1], [0], [0], [1], [0, 0, 1, 1], [], []>} : vector<16x256xbf16>, vector<256x256xbf16>, vector<16x256xf32> -> vector<16x256xf32>
    %3 = vector.extract_strided_slice %2 {offsets = [0, 0], sizes = [16, 32], strides = [1, 1]} : vector<16x256xf32> to vector<16x32xf32>
    %4 = vector.extract_strided_slice %2 {offsets = [0, 32], sizes = [16, 32], strides = [1, 1]} : vector<16x256xf32> to vector<16x32xf32>
    %5 = arith.maximumf %3, %4 : vector<16x32xf32>
    %6 = vector.extract_strided_slice %2 {offsets = [0, 64], sizes = [16, 32], strides = [1, 1]} : vector<16x256xf32> to vector<16x32xf32>
    %7 = arith.maximumf %5, %6 : vector<16x32xf32>
    %8 = vector.extract_strided_slice %2 {offsets = [0, 96], sizes = [16, 32], strides = [1, 1]} : vector<16x256xf32> to vector<16x32xf32>
    %9 = arith.maximumf %7, %8 : vector<16x32xf32>
    %10 = vector.extract_strided_slice %2 {offsets = [0, 128], sizes = [16, 32], strides = [1, 1]} : vector<16x256xf32> to vector<16x32xf32>
    %11 = arith.maximumf %9, %10 : vector<16x32xf32>
    %12 = vector.extract_strided_slice %2 {offsets = [0, 160], sizes = [16, 32], strides = [1, 1]} : vector<16x256xf32> to vector<16x32xf32>
    %13 = arith.maximumf %11, %12 : vector<16x32xf32>
    %14 = vector.extract_strided_slice %2 {offsets = [0, 192], sizes = [16, 32], strides = [1, 1]} : vector<16x256xf32> to vector<16x32xf32>
    %15 = arith.maximumf %13, %14 : vector<16x32xf32>
    %16 = vector.extract_strided_slice %2 {offsets = [0, 224], sizes = [16, 32], strides = [1, 1]} : vector<16x256xf32> to vector<16x32xf32>
    %17 = arith.maximumf %15, %16 : vector<16x32xf32>
    %c0_3 = arith.constant 0 : index
    %c0_4 = arith.constant 0 : index
    %18 = vector.load %arg3[%c0_3, %c0_4] : memref<1x32xf32, #tpu.memory_space<vmem>>, vector<1x32xf32>
    %19 = vector.broadcast %18 : vector<1x32xf32> to vector<16x32xf32>
    %20 = arith.addf %17, %19 : vector<16x32xf32>
    %c0_5 = arith.constant 0 : index
    %c0_6 = arith.constant 0 : index
    %21 = vector.load %arg4[%c0_5, %c0_6] : memref<16x32xf32, #tpu.memory_space<vmem>>, vector<16x32xf32>
    tpu.vector_store %arg4[%c0_5, %c0_6], %20 {strides = array<i32>} : memref<16x32xf32, #tpu.memory_space<vmem>>, vector<16x32xf32>,
    return
  }
  func.func @transform_0(%arg0: i32) -> (i32, i32) {
    %c0_i32 = arith.constant 0 : i32
    %c0_i32_0 = arith.constant 0 : i32
    return %arg0, %c0_i32 : i32, i32
  }
  func.func @transform_1(%arg0: i32) -> (i32, i32) {
    %c0_i32 = arith.constant 0 : i32
    %c0_i32_0 = arith.constant 0 : i32
    %c0_i32_1 = arith.constant 0 : i32
    return %c0_i32, %c0_i32_0 : i32, i32
  }
  func.func @transform_2(%arg0: i32) -> (i32, i32) {
    %c0_i32 = arith.constant 0 : i32
    %c0_i32_0 = arith.constant 0 : i32
    %c0_i32_1 = arith.constant 0 : i32
    return %c0_i32, %c0_i32_0 : i32, i32
  }
  func.func @transform_3(%arg0: i32) -> (i32, i32) {
    %c0_i32 = arith.constant 0 : i32
    %c0_i32_0 = arith.constant 0 : i32
    return %arg0, %c0_i32 : i32, i32
  }
}

</mosaic_0001>

<bundles_post_ra>
// kernel: tpu_custom_call.1
= control target key start
LH: loop header
LB: loop body
LE: loop exit
PB: predicated region body
PF: predicated region fallthrough
CT: control target
= control target key end

     0   :  { %8 = vsyncpa [#allocation3], 0  ;;  %s696_s0 = inlined_call_operand.hbm [shape: bf16[16,256], index: 0, kind: input, shape index: {}]   ;;  %s697_s1 = inlined_call_operand.hbm [shape: bf16[256,256], index: 1, kind: input, shape index: {}]   ;;  %s698_s2 = inlined_call_operand.vmem [shape: f32[1,32], index: 2, kind: input, shape index: {}]   ;;  %s699_s3 = inlined_call_operand.hbm [shape: f32[16,32], index: 3, kind: output, shape index: {}]  }
   0x1   :  { %9 = vsyncpa [#allocation6], 0 }
   0x2   :  { %10 = vsyncpa [#allocation4], 0  ;;  %s15_s14 = sshll.u32 %s696_s0, 4  ;;  %s647_s15 = smov [#allocation2]   ;;  %s16_s14 = int_to_ptr.hbm [resolvable:$true] %s15_s14 }
   0x3   :  { %s17_s16 = sshll.u32 %s647_s15, 4  ;;  %s28_s19 = sshll.u32 %s697_s1, 4  ;;  %s18_s16 = int_to_ptr.vmem [resolvable:$true] %s17_s16  ;;  %s29_s19 = int_to_ptr.hbm [resolvable:$true] %s28_s19 }
   0x4   :  { %s648_s20 = smov 128   ;;  %s649_s21 = smov 8  }
   0x5   :  { %23 = dma.hbm_to_vmem [thread:$0]  %s16_s14, 256, %s18_s16, [#allocation3], %s648_s20, %s648_s20, %s649_s21  }
   0x6   :  { %s650_s22 = smov [#allocation5]  }
   0x7   :  { %s30_s23 = sshll.u32 %s650_s22, 4  ;;  %s31_s23 = int_to_ptr.vmem [resolvable:$true] %s30_s23 }
   0x8   :  { %36 = dma.hbm_to_vmem [thread:$0]  %s29_s19, 4096, %s31_s23, [#allocation6], %s648_s20, %s648_s20, %s649_s21  }
   0x9   :  { %641 = dma.done.wait [#allocation3], 256  }
   0xa   :  { %642 = vsyncadd [#allocation3], 4294967040 }
   0xb   :  { %643 = dma.done.wait [#allocation6], 4096  }
   0xc   :  { %644 = vsyncadd [#allocation6], 4294963200  ;;  %v456_v0 = vld [vmem:[#allocation5 + $0x70] sm:$0xf]  ;;  %v543_v1 = vld [vmem:[#allocation5 + $0x74] sm:$0xf0] }
   0xd   :  { %v520_v2 = vld [vmem:[#allocation5 + $0xf0] sm:$0xf]  ;;  %v457_v3 = vor.u32 %v543_v1, %v456_v0  ;;  %v559_v4 = vld [vmem:[#allocation5 + $0xf4] sm:$0xf0]  ;;  %v542_v5 = vld [vmem:[#allocation5 + $0x74] sm:$0xf] }
   0xe   :  { %v458_v6 = vld [vmem:[#allocation5 + $0x78] sm:$0xf0]  ;;  %v521_v7 = vor.u32 %v559_v4, %v520_v2  ;;  %v558_v9 = vld [vmem:[#allocation5 + $0xf4] sm:$0xf]  ;;  %v448_v11 = vld [vmem:[#allocation5 + $0x60] sm:$0xf] }
   0xf   :  { %v461_v8 = vor.u32 %v542_v5, %v458_v6  ;;  %v522_v10 = vld [vmem:[#allocation5 + $0xf8] sm:$0xf0]  ;;  %251 = vmatpush.bf16.msra.mxu0 %v457_v3  ;;  %v541_v13 = vld [vmem:[#allocation5 + $0x64] sm:$0xf0]  ;;  %v512_v14 = vld [vmem:[#allocation5 + $0xe0] sm:$0xf] }
  0x10   :  { %v525_v12 = vor.u32 %v558_v9, %v522_v10  ;;  %v557_v15 = vld [vmem:[#allocation5 + $0xe4] sm:$0xf0]  ;;  %265 = vmatpush.bf16.msra.mxu1 %v521_v7  ;;  %v449_v16 = vor.u32 %v541_v13, %v448_v11  ;;  %v540_v18 = vld [vmem:[#allocation5 + $0x64] sm:$0xf]  ;;  %v450_v19 = vld [vmem:[#allocation5 + $0x68] sm:$0xf0] }
  0x11   :  { %279 = vmatpush.bf16.msra.mxu2 %v461_v8  ;;  %v513_v17 = vor.u32 %v557_v15, %v512_v14  ;;  %v556_v20 = vld [vmem:[#allocation5 + $0xe4] sm:$0xf]  ;;  %v453_v21 = vor.u32 %v540_v18, %v450_v19  ;;  %v514_v22 = vld [vmem:[#allocation5 + $0xe8] sm:$0xf0]  ;;  %v440_v23 = vld [vmem:[#allocation5 + $0x50] sm:$0xf] }
  0x12   :  { %293 = vmatpush.bf16.msra.mxu3 %v525_v12  ;;  %v539_v24 = vld [vmem:[#allocation5 + $0x54] sm:$0xf0]  ;;  %v517_v25 = vor.u32 %v556_v20, %v514_v22  ;;  %v504_v26 = vld [vmem:[#allocation5 + $0xd0] sm:$0xf]  ;;  %v538_v28 = vld [vmem:[#allocation5 + $0x54] sm:$0xf] }
  0x13   :  { %v555_v27 = vld [vmem:[#allocation5 + $0xd4] sm:$0xf0]  ;;  %252 = vmatpush.bf16.msra.mxu0 %v449_v16  ;;  %v441_v29 = vor.u32 %v539_v24, %v440_v23  ;;  %v442_v30 = vld [vmem:[#allocation5 + $0x58] sm:$0xf0]  ;;  %v554_v31 = vld [vmem:[#allocation5 + $0xd4] sm:$0xf] }
  0x14   :  { %v506_v32 = vld [vmem:[#allocation5 + $0xd8] sm:$0xf0]  ;;  %266 = vmatpush.bf16.msra.mxu1 %v513_v17  ;;  %v505_v33 = vor.u32 %v555_v27, %v504_v26  ;;  %v445_v34 = vor.u32 %v538_v28, %v442_v30  ;;  %v432_v35 = vld [vmem:[#allocation5 + $0x40] sm:$0xf]  ;;  %v537_v36 = vld [vmem:[#allocation5 + $0x44] sm:$0xf0] }
  0x15   :  { %280 = vmatpush.bf16.msra.mxu2 %v453_v21  ;;  %v496_v37 = vld [vmem:[#allocation5 + $0xc0] sm:$0xf]  ;;  %v509_v38 = vor.u32 %v554_v31, %v506_v32  ;;  %v553_v39 = vld [vmem:[#allocation5 + $0xc4] sm:$0xf0]  ;;  %v536_v40 = vld [vmem:[#allocation5 + $0x44] sm:$0xf]  ;;  %v433_v44 = vor.u32 %v537_v36, %v432_v35 }
  0x16   :  { %294 = vmatpush.bf16.msra.mxu3 %v517_v25  ;;  %v434_v41 = vld [vmem:[#allocation5 + $0x48] sm:$0xf0]  ;;  %v552_v42 = vld [vmem:[#allocation5 + $0xc4] sm:$0xf]  ;;  %v497_v45 = vor.u32 %v553_v39, %v496_v37  ;;  %v424_v47 = vld [vmem:[#allocation5 + $0x30] sm:$0xf] }
  0x17   :  { %v498_v43 = vld [vmem:[#allocation5 + $0xc8] sm:$0xf0]  ;;  %253 = vmatpush.bf16.msra.mxu0 %v441_v29  ;;  %v437_v46 = vor.u32 %v536_v40, %v434_v41  ;;  %v535_v48 = vld [vmem:[#allocation5 + $0x34] sm:$0xf0]  ;;  %v488_v49 = vld [vmem:[#allocation5 + $0xb0] sm:$0xf] }
  0x18   :  { %267 = vmatpush.bf16.msra.mxu1 %v505_v33  ;;  %v501_v50 = vor.u32 %v552_v42, %v498_v43  ;;  %v551_v51 = vld [vmem:[#allocation5 + $0xb4] sm:$0xf0]  ;;  %v534_v52 = vld [vmem:[#allocation5 + $0x34] sm:$0xf]  ;;  %v426_v53 = vld [vmem:[#allocation5 + $0x38] sm:$0xf0]  ;;  %v425_v56 = vor.u32 %v535_v48, %v424_v47 }
  0x19   :  { %281 = vmatpush.bf16.msra.mxu2 %v445_v34  ;;  %v550_v54 = vld [vmem:[#allocation5 + $0xb4] sm:$0xf]  ;;  %v490_v55 = vld [vmem:[#allocation5 + $0xb8] sm:$0xf0]  ;;  %v489_v57 = vor.u32 %v551_v51, %v488_v49  ;;  %v429_v58 = vor.u32 %v534_v52, %v426_v53  ;;  %v416_v59 = vld [vmem:[#allocation5 + $0x20] sm:$0xf] }
  0x1a   :  { %295 = vmatpush.bf16.msra.mxu3 %v509_v38  ;;  %v533_v60 = vld [vmem:[#allocation5 + $0x24] sm:$0xf0]  ;;  %v480_v61 = vld [vmem:[#allocation5 + $0xa0] sm:$0xf]  ;;  %v493_v62 = vor.u32 %v550_v54, %v490_v55  ;;  %v532_v0 = vld [vmem:[#allocation5 + $0x24] sm:$0xf] }
  0x1b   :  { %254 = vmatpush.bf16.msra.mxu0 %v433_v44  ;;  %v549_v63 = vld [vmem:[#allocation5 + $0xa4] sm:$0xf0]  ;;  %v418_v1 = vld [vmem:[#allocation5 + $0x28] sm:$0xf0]  ;;  %v548_v2 = vld [vmem:[#allocation5 + $0xa4] sm:$0xf]  ;;  %v417_v4 = vor.u32 %v533_v60, %v416_v59 }
  0x1c   :  { %268 = vmatpush.bf16.msra.mxu1 %v497_v45  ;;  %v482_v3 = vld [vmem:[#allocation5 + $0xa8] sm:$0xf0]  ;;  %v481_v5 = vor.u32 %v549_v63, %v480_v61  ;;  %v421_v6 = vor.u32 %v532_v0, %v418_v1  ;;  %v408_v7 = vld [vmem:[#allocation5 + $0x10] sm:$0xf]  ;;  %v531_v8 = vld [vmem:[#allocation5 + $0x14] sm:$0xf0] }
  0x1d   :  { %282 = vmatpush.bf16.msra.mxu2 %v437_v46  ;;  %v472_v9 = vld [vmem:[#allocation5 + $0x90] sm:$0xf]  ;;  %v485_v10 = vor.u32 %v548_v2, %v482_v3  ;;  %v547_v11 = vld [vmem:[#allocation5 + $0x94] sm:$0xf0]  ;;  %v530_v12 = vld [vmem:[#allocation5 + $0x14] sm:$0xf]  ;;  %v409_v16 = vor.u32 %v531_v8, %v408_v7 }
  0x1e   :  { %296 = vmatpush.bf16.msra.mxu3 %v501_v50  ;;  %v410_v13 = vld [vmem:[#allocation5 + $0x18] sm:$0xf0]  ;;  %v546_v14 = vld [vmem:[#allocation5 + $0x94] sm:$0xf]  ;;  %v473_v17 = vor.u32 %v547_v11, %v472_v9  ;;  %v400_v19 = vld [vmem:[#allocation5] sm:$0xf] }
  0x1f   :  { %255 = vmatpush.bf16.msra.mxu0 %v425_v56  ;;  %v474_v15 = vld [vmem:[#allocation5 + $0x98] sm:$0xf0]  ;;  %v413_v18 = vor.u32 %v530_v12, %v410_v13  ;;  %v529_v20 = vld [vmem:[#allocation5 + $0x4] sm:$0xf0]  ;;  %v464_v21 = vld [vmem:[#allocation5 + $0x80] sm:$0xf] }
  0x20   :  { %269 = vmatpush.bf16.msra.mxu1 %v489_v57  ;;  %v477_v22 = vor.u32 %v546_v14, %v474_v15  ;;  %v545_v23 = vld [vmem:[#allocation5 + $0x84] sm:$0xf0]  ;;  %v528_v24 = vld [vmem:[#allocation5 + $0x4] sm:$0xf]  ;;  %v402_v25 = vld [vmem:[#allocation5 + $0x8] sm:$0xf0]  ;;  %v401_v28 = vor.u32 %v529_v20, %v400_v19 }
  0x21   :  { %283 = vmatpush.bf16.msra.mxu2 %v429_v58  ;;  %v544_v26 = vld [vmem:[#allocation5 + $0x84] sm:$0xf]  ;;  %v466_v27 = vld [vmem:[#allocation5 + $0x88] sm:$0xf0]  ;;  %v392_v29 = vld [vmem:[#allocation2] sm:$0xf]  ;;  %v465_v31 = vor.u32 %v545_v23, %v464_v21  ;;  %v405_v32 = vor.u32 %v528_v24, %v402_v25 }
  0x22   :  { %297 = vmatpush.bf16.msra.mxu3 %v493_v62  ;;  %v527_v30 = vld [vmem:[#allocation2 + $0x4] sm:$0xf0]  ;;  %v526_v33 = vld [vmem:[#allocation2 + $0x4] sm:$0xf]  ;;  %v394_v34 = vld [vmem:[#allocation2 + $0x8] sm:$0xf0]  ;;  %v469_v35 = vor.u32 %v544_v26, %v466_v27 }
  0x23   :  { %256 = vmatpush.bf16.msra.mxu0 %v417_v4  ;;  %v393_v36 = vor.u32 %v527_v30, %v392_v29  ;;  %v397_v37 = vor.u32 %v526_v33, %v394_v34  ;;  %s651_s0 = smov 32   ;;  %s652_s1 = smov 64   ;;  %v568_v4 = vld [vmem:[%s698_s2] ss:$0 sm:$0xff]  ;;  %vm367_vm0 = vcmask 261120  }
  0x24   :  { %270 = vmatpush.bf16.msra.mxu1 %v481_v5  ;;  %s653_s24 = smov 96   ;;  %s654_s27 = smov [#allocation7]  }
  0x25   :  { %284 = vmatpush.bf16.msra.mxu2 %v421_v6  ;;  %s374_s28 = sshll.u32 %s654_s27, 4  ;;  %s376_s4 = sshll.u32 %s699_s3, 4  ;;  %s375_s28 = int_to_ptr.vmem [resolvable:$true] %s374_s28  ;;  %s377_s4 = int_to_ptr.hbm [resolvable:$true] %s376_s4 }
  0x26   :  { %298 = vmatpush.bf16.msra.mxu3 %v485_v10 }
  0x27   :  { %257 = vmatpush.bf16.msra.mxu0 %v409_v16 }
  0x28   :  { %271 = vmatpush.bf16.msra.mxu1 %v473_v17 }
  0x29   :  { %285 = vmatpush.bf16.msra.mxu2 %v413_v18 }
  0x2a   :  { %299 = vmatpush.bf16.msra.mxu3 %v477_v22 }
  0x2b   :  { %258 = vmatpush.bf16.msra.mxu0 %v401_v28 }
  0x2c   :  { %272 = vmatpush.bf16.msra.mxu1 %v465_v31 }
  0x2d   :  { %286 = vmatpush.bf16.msra.mxu2 %v405_v32 }
  0x2e   :  { %300 = vmatpush.bf16.msra.mxu3 %v469_v35  ;;  %259 = vmatmul.bf16.vlgmr.msra.gmra.mxu0 %v393_v36 }
  0x2f   :  { %273 = vmatmul.bf16.vlgmr.msra.gmra.mxu1 %v397_v37 }
  0x30   :  { %287 = vmatmul.bf16.vlgmr.msra.gmra.mxu2 %v393_v36 }
  0x31   :  { %301 = vmatmul.bf16.vlgmr.msra.gmra.mxu3 %v397_v37 }
  0xab   :  { %v260_v38 = vpop.f32.mrf.mxu0 }
  0xac   :  { %v274_v39 = vpop.f32.mrf.mxu1 }
  0xad   :  { %v275_v40 = vadd.f32 %v274_v39, %v260_v38 }
  0xaf   :  { %325 = vrot.lane.b32.xlu2 %v275_v40, %s651_s0  ;;  %317 = vrot.lane.b32.xlu1 %v275_v40, %s652_s1 }
  0xb0   :  { %309 = vrot.lane.b32.xlu0 %v275_v40, %s653_s24 }
  0xb3   :  { %v288_v41 = vpop.f32.mrf.mxu2  ;;  %v262_v43 = vpop.f32.mrf.mxu0 }
  0xb4   :  { %v302_v42 = vpop.f32.mrf.mxu3  ;;  %v276_v45 = vpop.f32.mrf.mxu1 }
  0xb5   :  { %v303_v44 = vadd.f32 %v302_v42, %v288_v41  ;;  %v277_v46 = vadd.f32 %v276_v45, %v262_v43 }
  0xb7   :  { %345 = vrot.lane.b32.xlu2 %v303_v44, %s652_s1  ;;  %319 = vrot.lane.b32.xlu1 %v277_v46, %s652_s1 }
  0xb8   :  { %311 = vrot.lane.b32.xlu0 %v277_v46, %s653_s24 }
  0xbb   :  { %v290_v47 = vpop.f32.mrf.mxu2 }
  0xbc   :  { %v304_v48 = vpop.f32.mrf.mxu3 }
  0xbd   :  { %v305_v49 = vadd.f32 %v304_v48, %v290_v47 }
  0xbf   :  { %327 = vrot.lane.b32.xlu2 %v277_v46, %s651_s0  ;;  %339 = vrot.lane.b32.xlu1 %v305_v49, %s653_s24 }
  0xc0   :  { %337 = vrot.lane.b32.xlu0 %v303_v44, %s653_s24 }
  0xc7   :  { %355 = vrot.lane.b32.xlu2 %v305_v49, %s651_s0  ;;  %353 = vrot.lane.b32.xlu1 %v303_v44, %s651_s0 }
  0xc8   :  { %347 = vrot.lane.b32.xlu0 %v305_v49, %s652_s1 }
 0x109   :  { %v326_v50 = vpop.permute.xlu2 %325 }
 0x111   :  { %v346_v53 = vpop.permute.xlu2 %345 }
 0x119   :  { %v328_v61 = vpop.permute.xlu2 %327 }
 0x121   :  { %v318_v51 = vpop.permute.xlu1 %317  ;;  %v356_v11 = vpop.permute.xlu2 %355 }
 0x122   :  { %v310_v52 = vpop.permute.xlu0 %309 }
 0x123   :  { %v315_v54 = vmax.f32 %v275_v40, %v310_v52 }
 0x125   :  { %v323_v56 = vmax.f32 %v315_v54, %v318_v51 }
 0x127   :  { %v331_v60 = vmax.f32 %v323_v56, %v326_v50 }
 0x129   :  { %v320_v55 = vpop.permute.xlu1 %319  ;;  %v333_v0 = vmax.f32 %v331_v60, %v303_v44 }
 0x12a   :  { %v312_v57 = vpop.permute.xlu0 %311 }
 0x12b   :  { %v316_v58 = vmax.f32 %v277_v46, %v312_v57 }
 0x12d   :  { %v324_v59 = vmax.f32 %v316_v58, %v320_v55 }
 0x12f   :  { %v332_v63 = vmax.f32 %v324_v59, %v328_v61 }
 0x131   :  { %v340_v62 = vpop.permute.xlu1 %339  ;;  %v334_v3 = vmax.f32 %v332_v63, %v305_v49 }
 0x132   :  { %v338_v1 = vpop.permute.xlu0 %337 }
 0x133   :  { %v343_v2 = vmax.f32 %v333_v0, %v338_v1  ;;  %v344_v6 = vmax.f32 %v334_v3, %v340_v62 }
 0x135   :  { %v351_v5 = vmax.f32 %v343_v2, %v346_v53 }
 0x139   :  { %v354_v7 = vpop.permute.xlu1 %353 }
 0x13a   :  { %v359_v8 = vmax.f32 %v351_v5, %v354_v7  ;;  %v348_v9 = vpop.permute.xlu0 %347 }
 0x13b   :  { %v352_v10 = vmax.f32 %v344_v6, %v348_v9 }
 0x13c   :  { %v365_v12 = vadd.f32 %v568_v4, %v359_v8 }
 0x13d   :  { %v360_v13 = vmax.f32 %v352_v10, %v356_v11 }
 0x13e   :  { %368 = vst.msk [vmem:[#allocation7] sm:$0xff] %vm367_vm0, %v365_v12 }
 0x13f   :  { %v366_v14 = vadd.f32 %v568_v4, %v360_v13 }
 0x141   :  { %369 = vst.msk [vmem:[#allocation7 + $0x8] sm:$0xff] %vm367_vm0, %v366_v14 }
 0x142   :  { %382 = dma.vmem_to_hbm [thread:$0]  %s375_s28, 256, %s377_s4, [#allocation4], %s648_s20, %s648_s20, %s649_s21  }
 0x143   :  { %645 = dma.done.wait [#allocation4], 256  }
 0x144   :  { %646 = vsyncadd [#allocation4], 4294967040 }
 0x145   :  { %387 = vsyncpa [#allocation3], 1 }
 0x146   :  { %388 = vsyncpa [#allocation6], 1 }
 0x147   :  { %389 = vsyncpa [#allocation4], 1 }

</bundles_post_ra>
